<compile_context>
chip_gen: v7x
topology: tpu7x:2x2x1
jax: 0.10.0
libtpu: 0.0.40
codegen_flags: <defaults>
</compile_context>

<pallas_src>
import functools

import jax
import jax.numpy as jnp
from jax.experimental import pallas as pl
from jax.experimental.pallas import tpu as pltpu


def _round_up(n, m):
    return ((n + m - 1) // m) * m


def _cdiv(a, b):
    return -(-a // b)


# --------------------------------------------------------------------------- #
# Kernels
# --------------------------------------------------------------------------- #
def _decoder_kernel_fused(x_ref, w1_ref, b1_ref, w2_ref, b2_ref, o_ref):
    """Whole hidden dim in one block (k_steps == 1): no accumulator scratch."""
    h = jnp.dot(x_ref[...], w1_ref[...], preferred_element_type=jnp.float32)
    h = jnp.maximum(h + b1_ref[...], 0.0)
    # TODO(synk): dropout == identity (eval mode).
    y = jnp.dot(h.astype(w2_ref.dtype), w2_ref[...],
                preferred_element_type=jnp.float32)
    o_ref[...] = (y + b2_ref[...]).astype(o_ref.dtype)


def _decoder_kernel_acc(x_ref, w1_ref, b1_ref, w2_ref, b2_ref, o_ref, acc_ref):
    """Hidden dim tiled over grid axis 1; f32 accumulator with b2 folded into init."""
    k = pl.program_id(1)

    @pl.when(k == 0)
    def _():
        # Init with the bias instead of zeros: removes the epilogue add for free.
        acc_ref[...] = jnp.broadcast_to(b2_ref[...], acc_ref.shape).astype(jnp.float32)

    h = jnp.dot(x_ref[...], w1_ref[...], preferred_element_type=jnp.float32)
    h = jnp.maximum(h + b1_ref[...], 0.0)
    # TODO(synk): dropout == identity (eval mode).
    acc_ref[...] += jnp.dot(h.astype(w2_ref.dtype), w2_ref[...],
                            preferred_element_type=jnp.float32)

    @pl.when(k == pl.num_programs(1) - 1)
    def _():
        o_ref[...] = acc_ref[...].astype(o_ref.dtype)


# --------------------------------------------------------------------------- #
# Hardware / feature queries
# --------------------------------------------------------------------------- #
@functools.lru_cache(maxsize=None)
def _single_buffer_supported():
    """One-time isolated probe: does this jax/Mosaic accept pl.Buffered(1) on an input?"""
    def probe_kernel(x_ref, o_ref):
        o_ref[...] = x_ref[...] * 2.0

    try:
        fn = pl.pallas_call(
            probe_kernel,
            out_shape=jax.ShapeDtypeStruct((16, 128), jnp.float32),
            grid=(2,),
            in_specs=[pl.BlockSpec((8, 128), lambda i: (0, 0),
                                   pipeline_mode=pl.Buffered(1))],
            out_specs=pl.BlockSpec((8, 128), lambda i: (i, 0)),
        )
        jax.block_until_ready(fn(jnp.ones((8, 128), jnp.float32)))
        return True
    except Exception:
        # Isolated probe: failure here only disables the single-buffer optimization.
        return False


def _vmem_capacity_bytes():
    try:
        info = pltpu.get_tpu_info()
        cap = getattr(info, "vmem_capacity_bytes", None)
        if cap:
            return int(cap)
    except Exception:
        pass
    return 64 * 1024 * 1024  # conservative default (v7x per-TensorCore)


def _block_footprint_bytes(tile_m, tile_h, d_pad, n_pad, k_steps, m_steps,
                           compute_itemsize, out_itemsize, single_buffer):
    """Worst-case VMEM footprint of all pipelined blocks + scratch."""
    def nbuf(const_index):
        return 1 if (single_buffer and const_index) else 2

    total = nbuf(m_steps == 1) * tile_m * d_pad * compute_itemsize       # x block
    total += nbuf(k_steps == 1) * d_pad * tile_h * compute_itemsize      # w1 block
    total += nbuf(k_steps == 1) * 8 * tile_h * 4                         # b1 (f32, 8-sublane pad)
    total += nbuf(k_steps == 1) * tile_h * n_pad * compute_itemsize      # w2 block
    total += nbuf(True) * 8 * n_pad * 4                                  # b2
    total += 2 * tile_m * n_pad * out_itemsize                           # output block
    if k_steps > 1:
        total += tile_m * n_pad * 4                                      # f32 accumulator
    return total


# --------------------------------------------------------------------------- #
# pallas_call builder
# --------------------------------------------------------------------------- #
def _build_decoder_call(m_steps, k_steps, tile_m, tile_h, d_pad, n_pad,
                        out_dtype, cost, vmem_limit_bytes, single_buffer):
    const = pl.Buffered(1) if single_buffer else None
    x_mode = const if m_steps == 1 else None

    if k_steps == 1:
        # Fast path: no reduction axis, no accumulator scratch; weights are constant-index.
        grid_spec = pltpu.PrefetchScalarGridSpec(
            num_scalar_prefetch=0,
            grid=(m_steps,),
            in_specs=[
                pl.BlockSpec((tile_m, d_pad), lambda i: (i, 0), pipeline_mode=x_mode),
                pl.BlockSpec((d_pad, tile_h), lambda i: (0, 0), pipeline_mode=const),
                pl.BlockSpec((1, tile_h), lambda i: (0, 0), pipeline_mode=const),
                pl.BlockSpec((tile_h, n_pad), lambda i: (0, 0), pipeline_mode=const),
                pl.BlockSpec((1, n_pad), lambda i: (0, 0), pipeline_mode=const),
            ],
            out_specs=pl.BlockSpec((tile_m, n_pad), lambda i: (i, 0)),
            scratch_shapes=[],
        )
        kernel = _decoder_kernel_fused
        semantics = ("parallel",)
    else:
        grid_spec = pltpu.PrefetchScalarGridSpec(
            num_scalar_prefetch=0,
            grid=(m_steps, k_steps),
            in_specs=[
                pl.BlockSpec((tile_m, d_pad), lambda i, k: (i, 0), pipeline_mode=x_mode),
                pl.BlockSpec((d_pad, tile_h), lambda i, k: (0, k)),
                pl.BlockSpec((1, tile_h), lambda i, k: (0, k)),
                pl.BlockSpec((tile_h, n_pad), lambda i, k: (k, 0)),
                pl.BlockSpec((1, n_pad), lambda i, k: (0, 0), pipeline_mode=const),
            ],
            out_specs=pl.BlockSpec((tile_m, n_pad), lambda i, k: (i, 0)),
            scratch_shapes=[pltpu.VMEM((tile_m, n_pad), jnp.float32)],
        )
        kernel = _decoder_kernel_acc
        semantics = ("parallel", "arbitrary")

    return pl.pallas_call(
        kernel,
        out_shape=jax.ShapeDtypeStruct((m_steps * tile_m, n_pad), out_dtype),
        grid_spec=grid_spec,
        compiler_params=pltpu.CompilerParams(
            dimension_semantics=semantics,
            vmem_limit_bytes=vmem_limit_bytes,
        ),
        cost_estimate=cost,
    )


# --------------------------------------------------------------------------- #
# Public wrapper
# --------------------------------------------------------------------------- #
def decoder_forward(x, w1, b1, w2, b2, *, max_tile_m=256,
                    compute_dtype=jnp.bfloat16, force_tile_h=None):
    """Decoder MLP forward: ReLU(x @ w1 + b1) @ w2 + b2 (dropout == identity, eval mode).

    x: [B, input_dim]; w1: [input_dim, hidden]; b1: [1, hidden] (or [hidden]);
    w2: [hidden, output_dim]; b2: [1, output_dim] (or [output_dim]).
    """
    B, input_dim = x.shape
    hidden_dim = w1.shape[1]
    output_dim = w2.shape[1]
    out_dtype = x.dtype

    compute_itemsize = jnp.dtype(compute_dtype).itemsize
    out_itemsize = jnp.dtype(out_dtype).itemsize

    # ---- Lane-dense / MXU-friendly padding of feature dims -------------------
    d_pad = _round_up(input_dim, 128)                                  # x lanes + matmul-1 K depth
    n_pad = 128 if output_dim <= 128 else _round_up(output_dim, 256)   # 256-wide MXU N on v6e/v7x
    h_align = 128 if hidden_dim <= 128 else 256

    # ---- Generation-aware VMEM budget ----------------------------------------
    vmem_cap = _vmem_capacity_bytes()             # ~128 MiB on v5e/v6e, ~64 MiB on v7x
    budget = int(vmem_cap * 0.65)                 # target for summed block footprint
    vmem_limit = max(32 << 20, min(int(vmem_cap * 0.75), 100 << 20))

    single_buffer = _single_buffer_supported()

    # ---- Batch tiling: 16-aligned (bf16 sublanes), minimal padding waste ------
    m_blocks = max(1, _cdiv(B, max_tile_m))
    tile_m = _round_up(_cdiv(B, m_blocks), 16)
    m_steps = _cdiv(B, tile_m)
    b_pad = m_steps * tile_m

    # ---- Hidden tiling: prefer k_steps == 1 if the weights fit the budget -----
    def k_steps_for(th):
        return _round_up(hidden_dim, th) // th

    if force_tile_h is not None:
        tile_h = _round_up(force_tile_h, 128)
    else:
        tile_h = _round_up(hidden_dim, h_align)
        while True:
            fp = _block_footprint_bytes(tile_m, tile_h, d_pad, n_pad,
                                        k_steps_for(tile_h), m_steps,
                                        compute_itemsize, out_itemsize, single_buffer)
            if fp <= budget or tile_h <= h_align:
                break
            new_th = _round_up(_cdiv(tile_h, 2), h_align)
            if new_th >= tile_h:
                break
            tile_h = new_th
        # If still over budget, shrink the batch tile.
        while tile_m > 16:
            fp = _block_footprint_bytes(tile_m, tile_h, d_pad, n_pad,
                                        k_steps_for(tile_h), m_steps,
                                        compute_itemsize, out_itemsize, single_buffer)
            if fp <= budget:
                break
            tile_m = max(16, (tile_m // 2) // 16 * 16)
            m_steps = _cdiv(B, tile_m)
            b_pad = m_steps * tile_m

    h_pad = _round_up(hidden_dim, tile_h)
    k_steps = h_pad // tile_h

    # ---- Operand preparation (zero padding is numerically exact) --------------
    x_c = jnp.pad(x.astype(compute_dtype),
                  ((0, b_pad - B), (0, d_pad - input_dim)))
    w1_c = jnp.pad(w1.astype(compute_dtype),
                   ((0, d_pad - input_dim), (0, h_pad - hidden_dim)))
    b1_c = jnp.pad(jnp.reshape(b1, (1, hidden_dim)).astype(jnp.float32),
                   ((0, 0), (0, h_pad - hidden_dim)))
    w2_c = jnp.pad(w2.astype(compute_dtype),
                   ((0, h_pad - hidden_dim), (0, n_pad - output_dim)))
    b2_c = jnp.pad(jnp.reshape(b2, (1, output_dim)).astype(jnp.float32),
                   ((0, 0), (0, n_pad - output_dim)))

    # ---- Cost hint for the XLA scheduler ---------------------------------------
    flops = 2 * b_pad * (d_pad * h_pad + h_pad * n_pad)
    weight_stream = m_steps if k_steps > 1 else 1    # weights re-streamed per batch tile
    bytes_accessed = (
        x_c.size * compute_itemsize
        + weight_stream * (w1_c.size + w2_c.size) * compute_itemsize
        + weight_stream * b1_c.size * 4
        + b2_c.size * 4
        + b_pad * n_pad * out_itemsize
    )
    cost = pl.CostEstimate(flops=int(flops), transcendentals=0,
                           bytes_accessed=int(bytes_accessed))

    call = _build_decoder_call(m_steps, k_steps, tile_m, tile_h, d_pad, n_pad,
                               out_dtype, cost, vmem_limit, single_buffer)
    out = call(x_c, w1_c, b1_c, w2_c, b2_c)
    return out[:B, :output_dim]


def _reference_forward(x, w1, b1, w2, b2, compute_dtype=jnp.bfloat16):
    # Same numerics as the kernel: bf16 MXU operands, f32 accumulation / elementwise.
    xc = x.astype(compute_dtype)
    h = jnp.dot(xc, w1.astype(compute_dtype), preferred_element_type=jnp.float32)
    h = jnp.maximum(h + jnp.reshape(b1, (1, -1)).astype(jnp.float32), 0.0)
    y = jnp.dot(h.astype(compute_dtype), w2.astype(compute_dtype),
                preferred_element_type=jnp.float32)
    y = y + jnp.reshape(b2, (1, -1)).astype(jnp.float32)
    return y.astype(x.dtype)


if __name__ == "__main__":
    key = jax.random.PRNGKey(0)

    # ---- Test 1: small decoder shapes (fused, k_steps == 1 fast path) ----------
    batch, input_dim, hidden_dim, output_dim = 8, 32, 64, 16
    kx, kw1, kb1, kw2, kb2 = jax.random.split(key, 5)
    x = jax.random.normal(kx, (batch, input_dim), dtype=jnp.float32)
    lim1 = 1.0 / (input_dim ** 0.5)
    lim2 = 1.0 / (hidden_dim ** 0.5)
    w1 = jax.random.uniform(kw1, (input_dim, hidden_dim), jnp.float32, -lim1, lim1)
    b1 = jax.random.uniform(kb1, (1, hidden_dim), jnp.float32, -lim1, lim1)
    w2 = jax.random.uniform(kw2, (hidden_dim, output_dim), jnp.float32, -lim2, lim2)
    b2 = jax.random.uniform(kb2, (1, output_dim), jnp.float32, -lim2, lim2)

    out = jax.block_until_ready(decoder_forward(x, w1, b1, w2, b2))
    ref = _reference_forward(x, w1, b1, w2, b2)
    assert out.shape == (batch, output_dim)
    assert jnp.allclose(out, ref, atol=5e-3, rtol=5e-3), "mismatch vs reference (fused)"

    # ---- Test 2: exercise the k-tiled accumulator path (hidden split in 2) ------
    hidden2 = 256
    kw1b, kb1b, kw2b, kb2b = jax.random.split(jax.random.PRNGKey(1), 4)
    lim1b = 1.0 / (input_dim ** 0.5)
    lim2b = 1.0 / (hidden2 ** 0.5)
    w1b = jax.random.uniform(kw1b, (input_dim, hidden2), jnp.float32, -lim1b, lim1b)
    b1b = jax.random.uniform(kb1b, (1, hidden2), jnp.float32, -lim1b, lim1b)
    w2b = jax.random.uniform(kw2b, (hidden2, output_dim), jnp.float32, -lim2b, lim2b)
    b2b = jax.random.uniform(kb2b, (1, output_dim), jnp.float32, -lim2b, lim2b)

    out2 = jax.block_until_ready(
        decoder_forward(x, w1b, b1b, w2b, b2b, force_tile_h=128))
    ref2 = _reference_forward(x, w1b, b1b, w2b, b2b)
    assert out2.shape == (batch, output_dim)
    assert jnp.allclose(out2, ref2, atol=5e-3, rtol=5e-3), "mismatch vs reference (acc)"

    print("KERNEL_OK")
</pallas_src>

<mosaic_0001>
module attributes {stable_mosaic.version = 11 : i64} {
  func.func @probe_kernel(%arg0: i32, %arg1: memref<8x128xf32, #tpu.memory_space<vmem>>, %arg2: memref<8x128xf32, #tpu.memory_space<vmem>>) attributes {dimension_semantics = [#tpu.dimension_semantics<arbitrary>], iteration_bounds = array<i64: 2>, scalar_prefetch = 0 : i64, scratch_operands = 0 : i64, tpu.core_type = #tpu.core_type<tc>, window_params = [{pipeline_mode = #tpu.pipeline_mode<synchronous>, transform_indices = @transform_0, window_bounds = array<i64: 8, 128>}, {transform_indices = @transform_1, window_bounds = array<i64: 8, 128>}]} {
    %c0 = arith.constant 0 : index
    %c0_0 = arith.constant 0 : index
    %0 = vector.load %arg1[%c0, %c0_0] : memref<8x128xf32, #tpu.memory_space<vmem>>, vector<8x128xf32>
    %cst = arith.constant 2.000000e+00 : f32
    %1 = vector.broadcast %cst : f32 to vector<8x128xf32>
    %2 = arith.mulf %0, %1 : vector<8x128xf32>
    %c0_1 = arith.constant 0 : index
    %c0_2 = arith.constant 0 : index
    %3 = vector.load %arg2[%c0_1, %c0_2] : memref<8x128xf32, #tpu.memory_space<vmem>>, vector<8x128xf32>
    tpu.vector_store %arg2[%c0_1, %c0_2], %2 {strides = array<i32>} : memref<8x128xf32, #tpu.memory_space<vmem>>, vector<8x128xf32>,
    return
  }
  func.func @transform_0(%arg0: i32) -> (i32, i32) {
    %c0_i32 = arith.constant 0 : i32
    %c0_i32_0 = arith.constant 0 : i32
    %c0_i32_1 = arith.constant 0 : i32
    return %c0_i32, %c0_i32_0 : i32, i32
  }
  func.func @transform_1(%arg0: i32) -> (i32, i32) {
    %c0_i32 = arith.constant 0 : i32
    %c0_i32_0 = arith.constant 0 : i32
    return %arg0, %c0_i32 : i32, i32
  }
}

module attributes {stable_mosaic.version = 11 : i64} {
  func.func @_decoder_kernel_fused(%arg0: i32, %arg1: memref<16x128xbf16, #tpu.memory_space<vmem>>, %arg2: memref<128x128xbf16, #tpu.memory_space<vmem>>, %arg3: memref<1x128xf32, #tpu.memory_space<vmem>>, %arg4: memref<128x128xbf16, #tpu.memory_space<vmem>>, %arg5: memref<1x128xf32, #tpu.memory_space<vmem>>, %arg6: memref<16x128xf32, #tpu.memory_space<vmem>>) attributes {dimension_semantics = [#tpu.dimension_semantics<parallel>], iteration_bounds = array<i64: 1>, scalar_prefetch = 0 : i64, scratch_operands = 0 : i64, tpu.core_type = #tpu.core_type<tc>, window_params = [{transform_indices = @transform_0, window_bounds = array<i64: 16, 128>}, {pipeline_mode = #tpu.pipeline_mode<synchronous>, transform_indices = @transform_1, window_bounds = array<i64: 128, 128>}, {pipeline_mode = #tpu.pipeline_mode<synchronous>, transform_indices = @transform_2, window_bounds = array<i64: 1, 128>}, {pipeline_mode = #tpu.pipeline_mode<synchronous>, transform_indices = @transform_3, window_bounds = array<i64: 128, 128>}, {pipeline_mode = #tpu.pipeline_mode<synchronous>, transform_indices = @transform_4, window_bounds = array<i64: 1, 128>}, {transform_indices = @transform_5, window_bounds = array<i64: 16, 128>}]} {
    %c0 = arith.constant 0 : index
    %c0_0 = arith.constant 0 : index
    %0 = vector.load %arg1[%c0, %c0_0] : memref<16x128xbf16, #tpu.memory_space<vmem>>, vector<16x128xbf16>
    %c0_1 = arith.constant 0 : index
    %c0_2 = arith.constant 0 : index
    %1 = vector.load %arg2[%c0_1, %c0_2] : memref<128x128xbf16, #tpu.memory_space<vmem>>, vector<128x128xbf16>
    %cst = arith.constant dense<0.000000e+00> : vector<16x128xf32>
    %2 = tpu.matmul %0, %1, %cst {dimension_numbers = #tpu.dot_dimension_numbers<[1], [0], [0], [1], [0, 0, 1, 1], [], []>} : vector<16x128xbf16>, vector<128x128xbf16>, vector<16x128xf32> -> vector<16x128xf32>
    %c0_3 = arith.constant 0 : index
    %c0_4 = arith.constant 0 : index
    %3 = vector.load %arg3[%c0_3, %c0_4] : memref<1x128xf32, #tpu.memory_space<vmem>>, vector<1x128xf32>
    %4 = vector.broadcast %3 : vector<1x128xf32> to vector<16x128xf32>
    %5 = arith.addf %2, %4 : vector<16x128xf32>
    %cst_5 = arith.constant 0.000000e+00 : f32
    %6 = vector.broadcast %cst_5 : f32 to vector<16x128xf32>
    %7 = arith.maximumf %5, %6 : vector<16x128xf32>
    %8 = arith.truncf %7 : vector<16x128xf32> to vector<16x128xbf16>
    %c0_6 = arith.constant 0 : index
    %c0_7 = arith.constant 0 : index
    %9 = vector.load %arg4[%c0_6, %c0_7] : memref<128x128xbf16, #tpu.memory_space<vmem>>, vector<128x128xbf16>
    %cst_8 = arith.constant dense<0.000000e+00> : vector<16x128xf32>
    %10 = tpu.matmul %8, %9, %cst_8 {dimension_numbers = #tpu.dot_dimension_numbers<[1], [0], [0], [1], [0, 0, 1, 1], [], []>} : vector<16x128xbf16>, vector<128x128xbf16>, vector<16x128xf32> -> vector<16x128xf32>
    %c0_9 = arith.constant 0 : index
    %c0_10 = arith.constant 0 : index
    %11 = vector.load %arg5[%c0_9, %c0_10] : memref<1x128xf32, #tpu.memory_space<vmem>>, vector<1x128xf32>
    %12 = vector.broadcast %11 : vector<1x128xf32> to vector<16x128xf32>
    %13 = arith.addf %10, %12 : vector<16x128xf32>
    %c0_11 = arith.constant 0 : index
    %c0_12 = arith.constant 0 : index
    %14 = vector.load %arg6[%c0_11, %c0_12] : memref<16x128xf32, #tpu.memory_space<vmem>>, vector<16x128xf32>
    tpu.vector_store %arg6[%c0_11, %c0_12], %13 {strides = array<i32>} : memref<16x128xf32, #tpu.memory_space<vmem>>, vector<16x128xf32>,
    return
  }
  func.func @transform_0(%arg0: i32) -> (i32, i32) {
    %c0_i32 = arith.constant 0 : i32
    %c0_i32_0 = arith.constant 0 : i32
    return %arg0, %c0_i32 : i32, i32
  }
  func.func @transform_1(%arg0: i32) -> (i32, i32) {
    %c0_i32 = arith.constant 0 : i32
    %c0_i32_0 = arith.constant 0 : i32
    %c0_i32_1 = arith.constant 0 : i32
    return %c0_i32, %c0_i32_0 : i32, i32
  }
  func.func @transform_2(%arg0: i32) -> (i32, i32) {
    %c0_i32 = arith.constant 0 : i32
    %c0_i32_0 = arith.constant 0 : i32
    %c0_i32_1 = arith.constant 0 : i32
    return %c0_i32, %c0_i32_0 : i32, i32
  }
  func.func @transform_3(%arg0: i32) -> (i32, i32) {
    %c0_i32 = arith.constant 0 : i32
    %c0_i32_0 = arith.constant 0 : i32
    %c0_i32_1 = arith.constant 0 : i32
    return %c0_i32, %c0_i32_0 : i32, i32
  }
  func.func @transform_4(%arg0: i32) -> (i32, i32) {
    %c0_i32 = arith.constant 0 : i32
    %c0_i32_0 = arith.constant 0 : i32
    %c0_i32_1 = arith.constant 0 : i32
    return %c0_i32, %c0_i32_0 : i32, i32
  }
  func.func @transform_5(%arg0: i32) -> (i32, i32) {
    %c0_i32 = arith.constant 0 : i32
    %c0_i32_0 = arith.constant 0 : i32
    return %arg0, %c0_i32 : i32, i32
  }
}

</mosaic_0001>

<bundles_post_ra>
// kernel: tpu_custom_call.1
= control target key start
LH: loop header
LB: loop body
LE: loop exit
PB: predicated region body
PF: predicated region fallthrough
CT: control target
= control target key end

     0   :  { %6 = vsyncpa [#allocation3], 0  ;;  %s482_s0 = inlined_call_operand.hbm [shape: f32[8,128], index: 0, kind: input, shape index: {}]   ;;  %s483_s1 = inlined_call_operand.hbm [shape: f32[16,128], index: 1, kind: output, shape index: {}]  }
   0x1   :  { %7 = vsyncpa [#allocation4], 0 }
   0x2   :  { %9 = vsyncpa [#allocation4 + $0x1], 0  ;;  %s352_s6 = smov 0   ;;  %s354_s7 = smov 0  }
   0x3   :  { %s356_s8 = smov 0   ;;  %s358_s9 = smov 0  }
   0x4 LB: > { %s373_s10 = sadd.s32 4294967295, %s338_s9   ;;  %s184_s11 = sadd.s32 4294967294, %s338_s9   ;;  %s338_s9 = sphi %s358_s9, %s499_s9   ;;  %s334_s8 = sphi %s356_s8, %s498_s8   ;;  %s330_s7 = sphi %s354_s7, %s497_s7   ;;  %s326_s6 = sphi %s352_s6, %s496_s6  }
   0x5   : > { %s377_s12 = sadd.s32 1, %s338_s9   ;;  %s43_s13 = sadd.s32 1, %s334_s8 }
   0x6   : > { %s40_s14 = ssub.s32 %s338_s9, %s377_s12  ;;  %p53_p0 = scmp.ne.s32.totalorder %s334_s8, %s330_s7 }
   0x7   : > { %p41_p1 = scmp.eq.s32.totalorder %s40_s14, 0  ;;  %p54_p2 = scmp.eq.s32.totalorder %s373_s10, 1 }
   0x8   : > { %p59_p3 = scmp.ne.s32.totalorder %s330_s7, %s326_s6  ;;  %p60_p4 = scmp.eq.s32.totalorder %s184_s11, 1 }
   0x9   : > { %s388_s15 = scalar_select %p41_p1, %s334_s8, %s43_s13  }
   0xa   : > { %p390_p5 = por %p54_p2, %p53_p0  ;;  %p394_p6 = por %p60_p4, %p59_p3 }
   0xb   : > { %p185_p7 = scmp.ge.s32.totalorder %s338_s9, 1  ;;  %p67_p8 = scmp.lt.s32.totalorder %s338_s9, 3 }
   0xc   : > { %s487_s16 = scalar_select %p390_p5, 1, 0 }
   0xd   : > { %s488_s17 = scalar_select %p394_p6, 1, 0 }
   0xe   : > { %p484_p9 = scmp.eq.s32.totalorder %s373_s10, 0  ;;  %p401_p10 = pnand %p185_p7, %p67_p8 }
   0xf   : > { %s340_s19 = smov [#allocation2]   ;;  %s244_s24 = scalar_lea.hbm %s482_s0, 128 }
  0x10   : > { %s489_s18 = scalar_select %p401_p10, 1, 0 }
  0x11   : > { %s80_s20 = sshll.u32 %s340_s19, 4  ;;  %p200_p11 = pneg %p401_p10  ;;  %s81_s20 = int_to_ptr.vmem [resolvable:$true] %s80_s20 }
  0x12   : > { %p245_p13 = scmp.ne.s32.totalorder %s482_s0, %s244_s24  ;;  %p251_p3 = scmp.lt.u32.totalorder %s244_s24, %s482_s0 }
  0x13   : > { %p409_p12 = pnand %p484_p9, %p200_p11 }
  0x15   : > { %p246_p0 = pneg %p409_p12 }
  0x17   : > { %p247_p1 = pnand %p246_p0, %p245_p13 }
  0x19   : > { %p248_p2 = pneg %p247_p1 }
  0x1b   : > { %p253_p4 = pnand %p251_p3, %p248_p2 }
  0x1d   : > { %256 = shalt.err (!%p253_p4)
}
  0x1e   : > { %s257_s29 = scalar_lea.vmem %s81_s20, 128  ;;  %p265_p9 = scmp.lt.s32.totalorder %s81_s20, %s81_s20 }
  0x1f   : > { %p258_p7 = scmp.ne.s32.totalorder %s81_s20, %s257_s29  ;;  %p266_p6 = scmp.lt.s32.totalorder %s257_s29, %s257_s29 }
  0x21   : > { %p260_p8 = pnand %p258_p7, %p246_p0  ;;  %p267_p5 = por %p266_p6, %p265_p9 }
  0x23   : > { %p261_p11 = pneg %p260_p8 }
  0x25   : > { %p268_p10 = pnand %p267_p5, %p261_p11 }
  0x27   : > { %271 = shalt.err (!%p268_p10)
}
  0x28   : > { %203 = dma.hbm_to_vmem [thread:$0]  (!%p409_p12), %s482_s0, 128, %s81_s20, [#allocation3]  }
  0x29   : > { %p491_p13 = scmp.ne.s32.totalorder %s489_s18, 0 }
  0x2a   : > { %p492_p1 = scmp.eq.s32.totalorder (!%p491_p13), %s373_s10, 0 }
  0x2b   : > { %93 = sbr.rel (%p491_p13) target bundleno = 77 (0x4d), region = 24 }
  0x32   : > { %317 = dma.done.wait (%p492_p1), [#allocation3], 128   ;;  %p493_p0 = pmov %p492_p1 }
  0x33   : > { %s105_s3 = sand.u32 1, %s330_s7   ;;  %s191_s13 = sshll.u32 %s373_s10, 7  ;;  %v108_v0 = vld [vmem:[#allocation2] sm:$0xff] }
  0x34   : > { %319 = vsyncadd (%p493_p0), [#allocation3], 4294967168  ;;  %s189_s4 = sshll.u32 %s105_s3, 3  ;;  %v109_v1 = vmul.f32 2.0, %v108_v0  ;;  %s442_s19 = scalar_lea.hbm %s483_s1, %s191_s13 }
  0x35   : > { %s107_s5 = scalar_lea.vmem [#allocation5], %s189_s4  ;;  %s112_s20 = scalar_lea.sflag [#allocation4], %s105_s3 }
  0x36   : > { %s125_s11 = sshll.u32 %s107_s5, 4  ;;  %110 = vst [vmem:[%s107_s5] sm:$0xff] %v109_v1  ;;  %p494_p6 = scmp.ne.s32.totalorder %s487_s16, 0  ;;  %s437_s11 = int_to_ptr.vmem [resolvable:$true] %s125_s11 }
  0x37   : > { %s272_s21 = scalar_lea.vmem %s437_s11, 128  ;;  %s341_s10 = smov [#allocation5]  }
  0x38   : > { %p273_p5 = scmp.ne.s32.totalorder %s437_s11, %s272_s21  ;;  %s276_s22 = sshll.u32 %s341_s10, 4  ;;  %s277_s22 = int_to_ptr.vmem [resolvable:$false] %s276_s22 }
  0x39   : > { %s278_s23 = scalar_lea.vmem %s277_s22, 256  ;;  %p279_p12 = scmp.lt.s32.totalorder %s437_s11, %s277_s22 }
  0x3a   : > { %p274_p9 = pnand %p273_p5, %p494_p6  ;;  %p280_p2 = scmp.lt.s32.totalorder %s278_s23, %s272_s21 }
  0x3c   : > { %p275_p10 = pneg %p274_p9  ;;  %p281_p3 = por %p280_p2, %p279_p12 }
  0x3e   : > { %p282_p4 = pnand %p281_p3, %p275_p10 }
  0x40   : > { %285 = shalt.err (!%p282_p4)
}
  0x41   : > { %s286_s24 = scalar_lea.hbm %s442_s19, 128  ;;  %s290_s27 = scalar_lea.hbm %s483_s1, 256 }
  0x42   : > { %p287_p7 = scmp.ne.s32.totalorder %s442_s19, %s286_s24  ;;  %p291_p13 = scmp.lt.u32.totalorder %s442_s19, %s483_s1 }
  0x43   : > { %p292_p1 = scmp.lt.u32.totalorder %s290_s27, %s286_s24  ;;  %p294_p5 = scmp.lt.u32.totalorder %s286_s24, %s442_s19 }
  0x44   : > { %p288_p8 = pnand %p287_p7, %p494_p6 }
  0x45   : > { %p293_p0 = por %p292_p1, %p291_p13 }
  0x46   : > { %p289_p11 = pneg %p288_p8 }
  0x47   : > { %p295_p9 = por %p294_p5, %p293_p0 }
  0x49   : > { %p296_p10 = pnand %p295_p9, %p289_p11 }
  0x4b   : > { %299 = shalt.err (!%p296_p10)
}
  0x4c   : > { %198 = dma.vmem_to_hbm [thread:$0]  (%p494_p6), %s437_s11, 128, %s442_s19, %s112_s20  }
  0x4d PF: > { %p210_p12 = scmp.ge.s32.totalorder %s338_s9, 2  ;;  %s137_s30 = sand.u32 1, %s326_s6  }
  0x4e   : > { %p495_p2 = scmp.ne.s32.totalorder %s488_s17, 0  ;;  %s138_s2 = scalar_lea.sflag [#allocation4], %s137_s30 }
  0x50   : > { %p205_p3 = pnand %p210_p12, %p495_p2 }
  0x52   : > { %321 = dma.done.wait (!%p205_p3), %s138_s2, 128  }
  0x53   : > { %323 = vsyncadd (!%p205_p3), %s138_s2, 4294967168  ;;  %p12_p4 = scmp.ge.s32.totalorder %s377_s12, 4   ;;  %s496_s6 = smov %s330_s7 }
  0x54   : > { %s497_s7 = smov %s334_s8  ;;  %s498_s8 = smov %s388_s15 }
  0x55   : > { %s499_s9 = smov %s377_s12  ;;  %14 = sbr.rel (!%p12_p4) target bundleno = 4 (0x4), region = 61 }
  0x5c   :  { %143 = vsyncpa [#allocation3], 1 }
  0x5d   :  { %145 = vsyncpa [#allocation3 + $0x1], 1 }
  0x5e   :  { %146 = vsyncpa [#allocation4], 1 }
  0x5f   :  { %148 = vsyncpa [#allocation4 + $0x1], 1 }

// kernel: tpu_custom_call.1
= control target key start
LH: loop header
LB: loop body
LE: loop exit
PB: predicated region body
PF: predicated region fallthrough
CT: control target
= control target key end

     0   :  { %10 = vsyncpa [#allocation3], 0  ;;  %s626_s0 = inlined_call_operand.hbm [shape: bf16[16,128], index: 0, kind: input, shape index: {}]   ;;  %s627_s1 = inlined_call_operand.hbm [shape: bf16[128,128], index: 1, kind: input, shape index: {}]   ;;  %s628_s2 = inlined_call_operand.vmem [shape: f32[1,128], index: 2, kind: input, shape index: {}]   ;;  %s629_s3 = inlined_call_operand.hbm [shape: bf16[128,128], index: 3, kind: input, shape index: {}]   ;;  %s630_s4 = inlined_call_operand.vmem [shape: f32[1,128], index: 4, kind: input, shape index: {}]   ;;  %s631_s5 = inlined_call_operand.hbm [shape: f32[16,128], index: 5, kind: output, shape index: {}]  }
   0x1   :  { %11 = vsyncpa [#allocation6], 0 }
   0x2   :  { %12 = vsyncpa [#allocation4], 0  ;;  %s516_s18 = smov [#allocation5]   ;;  %s517_s20 = smov [#allocation2]  }
   0x3   :  { %s30_s19 = sshll.u32 %s516_s18, 4  ;;  %s18_s21 = sshll.u32 %s517_s20, 4  ;;  %s31_s19 = int_to_ptr.vmem [resolvable:$true] %s30_s19  ;;  %s556_s21 = int_to_ptr.vmem [resolvable:$true] %s18_s21 }
   0x4   :  { %s422_s24 = scalar_lea.hbm %s627_s1, 1024 }
   0x5   :  { %p423_p0 = scmp.ne.s32.totalorder %s627_s1, %s422_s24  ;;  %p426_p1 = scmp.lt.u32.totalorder %s422_s24, %s627_s1 }
   0x7   :  { %p428_p2 = pnand %p426_p1, %p423_p0 }
   0x9   :  { %431 = shalt.err (!%p428_p2)
}
   0xa   :  { %s432_s29 = scalar_lea.vmem %s31_s19, 1024  ;;  %p437_p4 = scmp.lt.s32.totalorder %s31_s19, %s31_s19 }
   0xb   :  { %p433_p3 = scmp.ne.s32.totalorder %s31_s19, %s432_s29  ;;  %p438_p5 = scmp.lt.s32.totalorder %s432_s29, %s432_s29 }
   0xd   :  { %p439_p6 = por %p438_p5, %p437_p4 }
   0xf   :  { %p440_p7 = pnand %p439_p6, %p433_p3 }
  0x11   :  { %443 = shalt.err (!%p440_p7)
}
  0x12   :  { %s518_s30 = smov 64   ;;  %s519_s6 = smov 4  }
  0x13   :  { %36 = dma.hbm_to_vmem [thread:$0]  %s627_s1, 1024, %s31_s19, [#allocation6], %s518_s30, %s518_s30, %s519_s6  }
  0x14   :  { %s444_s11 = scalar_lea.hbm %s626_s0, 128 }
  0x15   :  { %p445_p8 = scmp.ne.s32.totalorder %s626_s0, %s444_s11  ;;  %p448_p9 = scmp.lt.u32.totalorder %s444_s11, %s626_s0 }
  0x17   :  { %p450_p10 = pnand %p448_p9, %p445_p8 }
  0x19   :  { %453 = shalt.err (!%p450_p10)
}
  0x1a   :  { %s454_s16 = scalar_lea.vmem %s556_s21, 128  ;;  %p459_p12 = scmp.lt.s32.totalorder %s556_s21, %s556_s21 }
  0x1b   :  { %p455_p11 = scmp.ne.s32.totalorder %s556_s21, %s454_s16  ;;  %p460_p13 = scmp.lt.s32.totalorder %s454_s16, %s454_s16 }
  0x1d   :  { %p461_p0 = por %p460_p13, %p459_p12 }
  0x1f   :  { %p462_p1 = pnand %p461_p0, %p455_p11 }
  0x21   :  { %465 = shalt.err (!%p462_p1)
}
  0x22   :  { %24 = dma.hbm_to_vmem [thread:$0]  %s626_s0, 128, %s556_s21, [#allocation3], %s518_s30, %s518_s30, %s519_s6  }
  0x23   :  { %s520_s18 = smov [#allocation7]   ;;  %s466_s23 = scalar_lea.hbm %s629_s3, 1024 }
  0x24   :  { %s44_s19 = sshll.u32 %s520_s18, 4  ;;  %p467_p2 = scmp.ne.s32.totalorder %s629_s3, %s466_s23  ;;  %s45_s19 = int_to_ptr.vmem [resolvable:$true] %s44_s19 }
  0x25   :  { %p470_p3 = scmp.lt.u32.totalorder %s466_s23, %s629_s3 }
  0x27   :  { %p472_p4 = pnand %p470_p3, %p467_p2 }
  0x29   :  { %475 = shalt.err (!%p472_p4)
}
  0x2a   :  { %s476_s28 = scalar_lea.vmem %s45_s19, 1024  ;;  %p481_p6 = scmp.lt.s32.totalorder %s45_s19, %s45_s19 }
  0x2b   :  { %p477_p5 = scmp.ne.s32.totalorder %s45_s19, %s476_s28  ;;  %p482_p7 = scmp.lt.s32.totalorder %s476_s28, %s476_s28 }
  0x2d   :  { %p483_p8 = por %p482_p7, %p481_p6 }
  0x2f   :  { %p484_p9 = pnand %p483_p8, %p477_p5 }
  0x31   :  { %487 = shalt.err (!%p484_p9)
}
  0x32   :  { %50 = dma.hbm_to_vmem [thread:$0]  %s629_s3, 1024, %s45_s19, [#allocation6], %s518_s30, %s518_s30, %s519_s6  }
  0x33   :  { %510 = dma.done.wait [#allocation3], 128  }
  0x34   :  { %511 = vsyncadd [#allocation3], 4294967168 }
  0x35   :  { %512 = dma.done.wait [#allocation6], 2048  }
  0x36   :  { %513 = vsyncadd [#allocation6], 4294965248  ;;  %v521_v0 = vmov 0.0   ;;  %vm522_vm0 = vmmov 0   ;;  %v405_v1 = vld [vmem:[#allocation5] sm:$0xff]   ;;  %v406_v2 = vld [vmem:[#allocation5 + $0x8] sm:$0xff]  }
  0x37   :  { %355 = vmatprep.subr.bf16.mxu0 %v521_v0  ;;  %371 = vmatprep.mubr.msk.bf16.mxu0 %vm522_vm0, %v521_v0  ;;  %v407_v3 = vld [vmem:[#allocation5 + $0x10] sm:$0xff]   ;;  %v414_v4 = vld [vmem:[#allocation7] sm:$0xff]   ;;  %v408_v5 = vld [vmem:[#allocation5 + $0x18] sm:$0xff]   ;;  %s523_s7 = smov [#allocation8]  }
  0x38   :  { %375 = vmatprep.subr.bf16.mxu1 %v521_v0  ;;  %391 = vmatprep.mubr.msk.bf16.mxu1 %vm522_vm0, %v521_v0  ;;  %v415_v6 = vld [vmem:[#allocation7 + $0x8] sm:$0xff]   ;;  %v409_v7 = vld [vmem:[#allocation5 + $0x20] sm:$0xff]   ;;  %v416_v8 = vld [vmem:[#allocation7 + $0x10] sm:$0xff]   ;;  %s305_s8 = sshll.u32 %s523_s7, 4  ;;  %s306_s8 = int_to_ptr.vmem [resolvable:$true] %s305_s8 }
  0x39   :  { %356 = vmatpush3.bf16.msra.mxu0 %v405_v1  ;;  %376 = vmatpush3.bf16.msra.mxu1 %v414_v4  ;;  %v410_v9 = vld [vmem:[#allocation5 + $0x28] sm:$0xff]   ;;  %v417_v10 = vld [vmem:[#allocation7 + $0x18] sm:$0xff]   ;;  %v411_v11 = vld [vmem:[#allocation5 + $0x30] sm:$0xff]   ;;  %p493_p11 = scmp.lt.s32.totalorder %s306_s8, %s306_s8 }
  0x3a   :  { %357 = vmatprep.subr.bf16.mxu0 %v521_v0  ;;  %377 = vmatprep.subr.bf16.mxu1 %v521_v0  ;;  %v418_v12 = vld [vmem:[#allocation7 + $0x20] sm:$0xff]   ;;  %v412_v13 = vld [vmem:[#allocation5 + $0x38] sm:$0xff]   ;;  %v419_v14 = vld [vmem:[#allocation7 + $0x28] sm:$0xff]  }
  0x3b   :  { %v413_v15 = vld [vmem:[#allocation2] sm:$0xff]   ;;  %v420_v16 = vld [vmem:[#allocation7 + $0x30] sm:$0xff]  }
  0x3c   :  { %v421_v17 = vld [vmem:[#allocation7 + $0x38] sm:$0xff]  }
  0x3d   :  { %358 = vmatpush3.bf16.msra.mxu0 %v406_v2  ;;  %378 = vmatpush3.bf16.msra.mxu1 %v415_v6  ;;  %v318_v18 = vld [vmem:[%s628_s2] ss:$0 sm:$0xff]  ;;  %s488_s2 = scalar_lea.vmem %s306_s8, 256 }
  0x3e   :  { %359 = vmatprep.subr.bf16.mxu0 %v521_v0  ;;  %379 = vmatprep.subr.bf16.mxu1 %v521_v0  ;;  %v328_v28 = vld [vmem:[%s630_s4] ss:$0 sm:$0xff]  ;;  %p489_p10 = scmp.ne.s32.totalorder %s306_s8, %s488_s2  ;;  %p494_p12 = scmp.lt.s32.totalorder %s488_s2, %s488_s2 }
  0x40   :  { %p495_p13 = por %p494_p12, %p493_p11 }
  0x41   :  { %360 = vmatpush3.bf16.msra.mxu0 %v407_v3  ;;  %380 = vmatpush3.bf16.msra.mxu1 %v416_v8 }
  0x42   :  { %361 = vmatprep.subr.bf16.mxu0 %v521_v0  ;;  %381 = vmatprep.subr.bf16.mxu1 %v521_v0  ;;  %p496_p0 = pnand %p495_p13, %p489_p10 }
  0x45   :  { %362 = vmatpush3.bf16.msra.mxu0 %v408_v5  ;;  %382 = vmatpush3.bf16.msra.mxu1 %v417_v10 }
  0x46   :  { %363 = vmatprep.subr.bf16.mxu0 %v521_v0  ;;  %383 = vmatprep.subr.bf16.mxu1 %v521_v0 }
  0x49   :  { %364 = vmatpush3.bf16.msra.mxu0 %v409_v7  ;;  %384 = vmatpush3.bf16.msra.mxu1 %v418_v12 }
  0x4a   :  { %365 = vmatprep.subr.bf16.mxu0 %v521_v0  ;;  %385 = vmatprep.subr.bf16.mxu1 %v521_v0 }
  0x4d   :  { %366 = vmatpush3.bf16.msra.mxu0 %v410_v9  ;;  %386 = vmatpush3.bf16.msra.mxu1 %v419_v14 }
  0x4e   :  { %367 = vmatprep.subr.bf16.mxu0 %v521_v0  ;;  %387 = vmatprep.subr.bf16.mxu1 %v521_v0 }
  0x51   :  { %368 = vmatpush3.bf16.msra.mxu0 %v411_v11  ;;  %388 = vmatpush3.bf16.msra.mxu1 %v420_v16 }
  0x52   :  { %369 = vmatprep.subr.bf16.mxu0 %v521_v0  ;;  %389 = vmatprep.subr.bf16.mxu1 %v521_v0 }
  0x55   :  { %370 = vmatpush3.bf16.msra.mxu0 %v412_v13  ;;  %390 = vmatpush3.bf16.msra.mxu1 %v421_v17 }
  0x58   :  { %372 = vmatmul.mubr.bf16.vlgmr.msra.gmra.mrb[0].mxu0 %v413_v15 }
 0x12b   :  { %v176_v19 = vpop.f32.mrb[0].mxu0 }
 0x12c   :  { %v177_v20 = vadd.f32 %v318_v18, %v176_v19  ;;  %v373_v21 = vpop.f32.mrb[1].mxu0 }
 0x12d   :  { %v179_v22 = vpop.f32.mrb[2].mxu0 }
 0x12e   :  { %v180_v23 = vadd.f32 %v318_v18, %v179_v22  ;;  %v374_v24 = vpop.f32.mrb[3].mxu0  ;;  %v183_v25 = vmax.f32 %v177_v20, 0.0 }
 0x130   :  { %v184_v26 = vmax.f32 %v180_v23, 0.0 }
 0x132   :  { %v185_v27 = vpack.c.bf16 %v184_v26, %v183_v25 }
 0x134   :  { %392 = vmatmul.mubr.bf16.vlgmr.msra.gmra.mrb[0].mxu1 %v185_v27 }
 0x207   :  { %v291_v29 = vpop.f32.mrb[0].mxu1 }
 0x208   :  { %v292_v30 = vadd.f32 %v328_v28, %v291_v29  ;;  %v393_v31 = vpop.f32.mrb[1].mxu1 }
 0x209   :  { %v294_v32 = vpop.f32.mrb[2].mxu1 }
 0x20a   :  { %298 = vst [vmem:[#allocation8] sm:$0xff] %v292_v30  ;;  %v295_v33 = vadd.f32 %v328_v28, %v294_v32  ;;  %v394_v34 = vpop.f32.mrb[3].mxu1 }
 0x20c   :  { %299 = vst [vmem:[#allocation8 + $0x8] sm:$0xff] %v295_v33 }
 0x20d   :  { %499 = shalt.err (!%p496_p0)
}
 0x20e   :  { %s500_s10 = scalar_lea.hbm %s631_s5, 256 }
 0x20f   :  { %p501_p1 = scmp.ne.s32.totalorder %s631_s5, %s500_s10  ;;  %p504_p2 = scmp.lt.u32.totalorder %s500_s10, %s631_s5 }
 0x211   :  { %p506_p3 = pnand %p504_p2, %p501_p1 }
 0x213   :  { %509 = shalt.err (!%p506_p3)
}
 0x214   :  { %s524_s15 = smov 128   ;;  %s525_s16 = smov 8  }
 0x215   :  { %311 = dma.vmem_to_hbm [thread:$0]  %s306_s8, 256, %s631_s5, [#allocation4], %s524_s15, %s524_s15, %s525_s16  }
 0x216   :  { %514 = dma.done.wait [#allocation4], 256  }
 0x217   :  { %515 = vsyncadd [#allocation4], 4294967040 }
 0x218   :  { %315 = vsyncpa [#allocation3], 1 }
 0x219   :  { %316 = vsyncpa [#allocation6], 1 }
 0x21a   :  { %317 = vsyncpa [#allocation4], 1 }

</bundles_post_ra>
